<compile_context>
chip_gen: v7x
topology: tpu7x:2x2x1
jax: 0.10.0
libtpu: 0.0.40
codegen_flags: <defaults>
</compile_context>

<pallas_src>
import functools

import jax
import jax.numpy as jnp
from jax import lax
from jax.experimental import pallas as pl
from jax.experimental.pallas import tpu as pltpu

EPS = 1e-5


def _sublane_multiple(dtype) -> int:
    """Second-minor tiling multiple for a dtype (f32: 8, bf16: 16, int8: 32)."""
    itemsize = jnp.dtype(dtype).itemsize
    return max(8, 32 // max(itemsize, 1))


def _round_up(x: int, m: int) -> int:
    return ((x + m - 1) // m) * m


# --------------------------------------------------------------------------- #
# Kernel
# --------------------------------------------------------------------------- #
def _prenorm_linear_kernel(x_ref, w_ref, b_ref, g_ref, beta_ref, o_ref,
                           normed_ref):
    """One (tm, tn) output tile of Linear(LayerNorm(x)).

    Grid = (row tiles i, W^T column tiles j).  LayerNorm of the current row
    tile is computed once (j == 0) into `normed_ref` (VMEM scratch, weight
    dtype) and reused for every column tile of the same rows.
    """
    @pl.when(pl.program_id(1) == 0)
    def _():
        x = x_ref[...].astype(jnp.float32)                       # (tm, D)
        mean = jnp.mean(x, axis=-1, keepdims=True)               # (tm, 1)
        centered = x - mean                                      # two-pass var
        var = jnp.mean(centered * centered, axis=-1, keepdims=True)
        inv = lax.rsqrt(var + EPS)
        normed = (centered * inv) * g_ref[...].astype(jnp.float32) \
                 + beta_ref[...].astype(jnp.float32)
        normed_ref[...] = normed.astype(normed_ref.dtype)

    # fn(normed): Linear.  MXU operands in the weight's native dtype, f32 acc.
    y = jnp.dot(normed_ref[...], w_ref[...],
                preferred_element_type=jnp.float32)              # (tm, tn)
    y = y + b_ref[...].astype(jnp.float32)
    o_ref[...] = y.astype(o_ref.dtype)


# --------------------------------------------------------------------------- #
# Sizing helpers
# --------------------------------------------------------------------------- #
def _vmem_capacity_bytes() -> int:
    try:
        return int(pltpu.get_tpu_info().vmem_capacity_bytes)
    except Exception:
        return 64 * 2**20            # conservative (v7x per-TensorCore size)


def _vmem_needed(tm, tn, d, x_itm, w_itm, o_itm) -> int:
    """Estimated VMEM footprint of one grid step, incl. in-body intermediates."""
    return (2 * tm * d * x_itm             # x row tiles (double-buffered)
            + 2 * d * tn * w_itm           # W^T column tiles
            + 2 * tm * tn * o_itm          # output tiles
            + 2 * 3 * d * 4                # bias / gamma / beta
            + tm * d * w_itm               # cached `normed` scratch
            + tm * d * 8                   # f32 x copy + f32 normed
            + tm * tn * 4)                 # f32 y before cast


def _pick_tiles(m, d, x_dtype, w_dtype, o_dtype, tm_req, budget):
    """Pick (tm, tn): prefer the largest row tile, then the widest weight slab."""
    sub = _sublane_multiple(x_dtype)
    x_itm = jnp.dtype(x_dtype).itemsize
    w_itm = jnp.dtype(w_dtype).itemsize
    o_itm = jnp.dtype(o_dtype).itemsize

    if tm_req is None:
        tm_req = 1024 if budget >= 72 * 2**20 else 512   # bigger tm on 128MiB parts

    tm_base = min(_round_up(tm_req, sub), _round_up(m, sub))
    # Guarantee >= 2 row-grid steps so the 'parallel' axis shards across both
    # v7x TensorCores (no-op when M is tiny).
    while tm_base > sub and pl.cdiv(m, tm_base) < 2:
        tm_base = max(sub, _round_up(tm_base // 2, sub))

    tn_candidates = [d]                                  # full weight slab first
    if d % 128 == 0:
        tn_candidates += [c for c in (512, 256, 128) if c < d]

    best = None
    for tn in tn_candidates:
        tm = tm_base
        while tm > sub and _vmem_needed(tm, tn, d, x_itm, w_itm, o_itm) > budget:
            tm = max(sub, _round_up(tm // 2, sub))
        fits = _vmem_needed(tm, tn, d, x_itm, w_itm, o_itm) <= budget
        key = (fits, tm, tn)                             # prefer fit, then big tm
        if best is None or key > best[0]:
            best = (key, tm, tn)
    return best[1], best[2]


# --------------------------------------------------------------------------- #
# pallas_call builder (cached per static configuration)
# --------------------------------------------------------------------------- #
@functools.lru_cache(maxsize=None)
def _build_call(m, d, tm, tn, x_dtype_name, w_dtype_name, o_dtype_name,
                vmem_limit):
    x_dtype = jnp.dtype(x_dtype_name)
    w_dtype = jnp.dtype(w_dtype_name)
    o_dtype = jnp.dtype(o_dtype_name)

    grid = (pl.cdiv(m, tm), pl.cdiv(d, tn))

    grid_spec = pltpu.PrefetchScalarGridSpec(
        num_scalar_prefetch=0,
        grid=grid,
        in_specs=[
            pl.BlockSpec((tm, d), lambda i, j: (i, 0)),   # x rows (reused over j)
            pl.BlockSpec((d, tn), lambda i, j: (0, j)),   # W^T column slab
            pl.BlockSpec((1, tn), lambda i, j: (0, j)),   # Linear bias slice
            pl.BlockSpec((1, d), lambda i, j: (0, 0)),    # LN gamma
            pl.BlockSpec((1, d), lambda i, j: (0, 0)),    # LN beta
        ],
        out_specs=pl.BlockSpec((tm, tn), lambda i, j: (i, j)),
        scratch_shapes=[pltpu.VMEM((tm, d), w_dtype)],    # cached normed rows
    )

    cost = pl.CostEstimate(
        flops=2 * m * d * d,
        transcendentals=m,                                # one rsqrt per row
        bytes_accessed=(m * d * x_dtype.itemsize
                        + m * d * o_dtype.itemsize
                        + d * d * w_dtype.itemsize
                        + 3 * d * 4),
    )

    call = pl.pallas_call(
        _prenorm_linear_kernel,
        out_shape=jax.ShapeDtypeStruct((m, d), o_dtype),
        grid_spec=grid_spec,
        compiler_params=pltpu.CompilerParams(
            dimension_semantics=("parallel", "arbitrary"),
            vmem_limit_bytes=int(vmem_limit),
        ),
        cost_estimate=cost,
    )
    return jax.jit(call)


# --------------------------------------------------------------------------- #
# Public wrapper
# --------------------------------------------------------------------------- #
def prenorm(x, w_t, b, gamma, beta, *, tm=None):
    """x: (B, S, D); w_t: (D, D) = W^T of Linear(dim, dim); b/gamma/beta: (D,)."""
    B, S, D = x.shape
    M = B * S

    capacity = _vmem_capacity_bytes()
    budget = (capacity * 3) // 4          # headroom for Mosaic internal scratch

    tm_eff, tn = _pick_tiles(M, D, x.dtype, w_t.dtype, x.dtype, tm, budget)

    x_itm = jnp.dtype(x.dtype).itemsize
    w_itm = jnp.dtype(w_t.dtype).itemsize
    needed = _vmem_needed(tm_eff, tn, D, x_itm, w_itm, x_itm)
    vmem_limit = min(budget, max(needed * 3 // 2, min(32 * 2**20, budget)))

    fn = _build_call(M, D, tm_eff, tn,
                     jnp.dtype(x.dtype).name, jnp.dtype(w_t.dtype).name,
                     jnp.dtype(x.dtype).name, int(vmem_limit))

    out = fn(x.reshape(M, D), w_t,
             b.reshape(1, D), gamma.reshape(1, D), beta.reshape(1, D))
    return out.reshape(B, S, D)


# --------------------------------------------------------------------------- #
# Reference + smoke test
# --------------------------------------------------------------------------- #
def _reference(x, w_t, b, gamma, beta):
    xf = x.astype(jnp.float32)
    mean = jnp.mean(xf, axis=-1, keepdims=True)
    var = jnp.mean((xf - mean) ** 2, axis=-1, keepdims=True)
    normed = gamma * (xf - mean) / jnp.sqrt(var + EPS) + beta
    y = jnp.einsum("bsd,de->bse", normed, w_t.astype(jnp.float32)) + b
    return y.astype(x.dtype)


if __name__ == "__main__":
    # TODO(synk): `fn` in PreNorm is an arbitrary injected sub-module; it is
    # instantiated deterministically here as Linear(dim, dim).
    B, S, D = 2, 8, 32
    key = jax.random.PRNGKey(0)
    kx, kw, kb, kg, kbe = jax.random.split(key, 5)

    x = jax.random.normal(kx, (B, S, D), dtype=jnp.float32)
    # Linear(dim, dim) params (W stored transposed so the kernel does x @ W^T + b)
    w_t = jax.random.normal(kw, (D, D), dtype=jnp.float32) / jnp.sqrt(D)
    b = jax.random.normal(kb, (D,), dtype=jnp.float32) * 0.1
    # LayerNorm affine params (non-trivial values to exercise the affine path)
    gamma = 1.0 + 0.1 * jax.random.normal(kg, (D,), dtype=jnp.float32)
    beta = 0.1 * jax.random.normal(kbe, (D,), dtype=jnp.float32)

    out = prenorm(x, w_t, b, gamma, beta)
    out = jax.block_until_ready(out)

    ref = _reference(x, w_t, b, gamma, beta)
    assert out.shape == (B, S, D)
    assert jnp.allclose(out, ref, atol=1e-4, rtol=1e-4), "mismatch vs reference"
    print("KERNEL_OK")
</pallas_src>

<mosaic_0001>
module attributes {stable_mosaic.version = 11 : i64} {
  func.func @_prenorm_linear_kernel(%arg0: i32, %arg1: i32, %arg2: memref<8x32xf32, #tpu.memory_space<vmem>>, %arg3: memref<32x32xf32, #tpu.memory_space<vmem>>, %arg4: memref<1x32xf32, #tpu.memory_space<vmem>>, %arg5: memref<1x32xf32, #tpu.memory_space<vmem>>, %arg6: memref<1x32xf32, #tpu.memory_space<vmem>>, %arg7: memref<8x32xf32, #tpu.memory_space<vmem>>, %arg8: memref<8x32xf32, #tpu.memory_space<vmem>>) attributes {dimension_semantics = [#tpu.dimension_semantics<parallel>, #tpu.dimension_semantics<arbitrary>], iteration_bounds = array<i64: 2, 1>, scalar_prefetch = 0 : i64, scratch_operands = 1 : i64, tpu.core_type = #tpu.core_type<tc>, window_params = [{transform_indices = @transform_0, window_bounds = array<i64: 8, 32>}, {transform_indices = @transform_1, window_bounds = array<i64: 32, 32>}, {transform_indices = @transform_2, window_bounds = array<i64: 1, 32>}, {pipeline_mode = #tpu.pipeline_mode<synchronous>, transform_indices = @transform_3, window_bounds = array<i64: 1, 32>}, {pipeline_mode = #tpu.pipeline_mode<synchronous>, transform_indices = @transform_4, window_bounds = array<i64: 1, 32>}, {transform_indices = @transform_5, window_bounds = array<i64: 8, 32>}]} {
    %c0_i32 = arith.constant 0 : i32
    %0 = arith.cmpi eq, %arg1, %c0_i32 : i32
    %1 = arith.extui %0 : i1 to i32
    %c0_i32_0 = arith.constant 0 : i32
    %2 = arith.cmpi ne, %1, %c0_i32_0 : i32
    scf.if %2 {
      %c0_8 = arith.constant 0 : index
      %c0_9 = arith.constant 0 : index
      %10 = vector.load %arg2[%c0_8, %c0_9] : memref<8x32xf32, #tpu.memory_space<vmem>>, vector<8x32xf32>
      %cst_10 = arith.constant dense<0.000000e+00> : vector<8xf32>
      %11 = vector.multi_reduction <add>, %10, %cst_10 [1] : vector<8x32xf32> to vector<8xf32>
      %12 = vector.shape_cast %11 : vector<8xf32> to vector<8x1xf32>
      %cst_11 = arith.constant 3.200000e+01 : f32
      %13 = vector.broadcast %cst_11 : f32 to vector<8x1xf32>
      %14 = arith.divf %12, %13 : vector<8x1xf32>
      %15 = vector.broadcast %14 : vector<8x1xf32> to vector<8x32xf32>
      %16 = arith.subf %10, %15 : vector<8x32xf32>
      %17 = arith.mulf %16, %16 : vector<8x32xf32>
      %cst_12 = arith.constant dense<0.000000e+00> : vector<8xf32>
      %18 = vector.multi_reduction <add>, %17, %cst_12 [1] : vector<8x32xf32> to vector<8xf32>
      %19 = vector.shape_cast %18 : vector<8xf32> to vector<8x1xf32>
      %cst_13 = arith.constant 3.200000e+01 : f32
      %20 = vector.broadcast %cst_13 : f32 to vector<8x1xf32>
      %21 = arith.divf %19, %20 : vector<8x1xf32>
      %cst_14 = arith.constant 9.99999974E-6 : f32
      %22 = vector.broadcast %cst_14 : f32 to vector<8x1xf32>
      %23 = arith.addf %21, %22 : vector<8x1xf32>
      %24 = math.rsqrt %23 : vector<8x1xf32>
      %25 = vector.broadcast %24 : vector<8x1xf32> to vector<8x32xf32>
      %26 = arith.mulf %16, %25 : vector<8x32xf32>
      %c0_15 = arith.constant 0 : index
      %c0_16 = arith.constant 0 : index
      %27 = vector.load %arg5[%c0_15, %c0_16] : memref<1x32xf32, #tpu.memory_space<vmem>>, vector<1x32xf32>
      %28 = vector.broadcast %27 : vector<1x32xf32> to vector<8x32xf32>
      %29 = arith.mulf %26, %28 : vector<8x32xf32>
      %c0_17 = arith.constant 0 : index
      %c0_18 = arith.constant 0 : index
      %30 = vector.load %arg6[%c0_17, %c0_18] : memref<1x32xf32, #tpu.memory_space<vmem>>, vector<1x32xf32>
      %31 = vector.broadcast %30 : vector<1x32xf32> to vector<8x32xf32>
      %32 = arith.addf %29, %31 : vector<8x32xf32>
      %c0_19 = arith.constant 0 : index
      %c0_20 = arith.constant 0 : index
      %33 = vector.load %arg8[%c0_19, %c0_20] : memref<8x32xf32, #tpu.memory_space<vmem>>, vector<8x32xf32>
      tpu.vector_store %arg8[%c0_19, %c0_20], %32 {strides = array<i32>} : memref<8x32xf32, #tpu.memory_space<vmem>>, vector<8x32xf32>,
    } else {
    }
    %c0 = arith.constant 0 : index
    %c0_1 = arith.constant 0 : index
    %3 = vector.load %arg8[%c0, %c0_1] : memref<8x32xf32, #tpu.memory_space<vmem>>, vector<8x32xf32>
    %c0_2 = arith.constant 0 : index
    %c0_3 = arith.constant 0 : index
    %4 = vector.load %arg3[%c0_2, %c0_3] : memref<32x32xf32, #tpu.memory_space<vmem>>, vector<32x32xf32>
    %cst = arith.constant dense<0.000000e+00> : vector<8x32xf32>
    %5 = tpu.matmul %3, %4, %cst {dimension_numbers = #tpu.dot_dimension_numbers<[1], [0], [0], [1], [0, 0, 1, 1], [], []>} : vector<8x32xf32>, vector<32x32xf32>, vector<8x32xf32> -> vector<8x32xf32>
    %c0_4 = arith.constant 0 : index
    %c0_5 = arith.constant 0 : index
    %6 = vector.load %arg4[%c0_4, %c0_5] : memref<1x32xf32, #tpu.memory_space<vmem>>, vector<1x32xf32>
    %7 = vector.broadcast %6 : vector<1x32xf32> to vector<8x32xf32>
    %8 = arith.addf %5, %7 : vector<8x32xf32>
    %c0_6 = arith.constant 0 : index
    %c0_7 = arith.constant 0 : index
    %9 = vector.load %arg7[%c0_6, %c0_7] : memref<8x32xf32, #tpu.memory_space<vmem>>, vector<8x32xf32>
    tpu.vector_store %arg7[%c0_6, %c0_7], %8 {strides = array<i32>} : memref<8x32xf32, #tpu.memory_space<vmem>>, vector<8x32xf32>,
    return
  }
  func.func @transform_0(%arg0: i32, %arg1: i32) -> (i32, i32) {
    %c0_i32 = arith.constant 0 : i32
    %c0_i32_0 = arith.constant 0 : i32
    return %arg0, %c0_i32 : i32, i32
  }
  func.func @transform_1(%arg0: i32, %arg1: i32) -> (i32, i32) {
    %c0_i32 = arith.constant 0 : i32
    %c0_i32_0 = arith.constant 0 : i32
    return %c0_i32, %arg1 : i32, i32
  }
  func.func @transform_2(%arg0: i32, %arg1: i32) -> (i32, i32) {
    %c0_i32 = arith.constant 0 : i32
    %c0_i32_0 = arith.constant 0 : i32
    return %c0_i32, %arg1 : i32, i32
  }
  func.func @transform_3(%arg0: i32, %arg1: i32) -> (i32, i32) {
    %c0_i32 = arith.constant 0 : i32
    %c0_i32_0 = arith.constant 0 : i32
    %c0_i32_1 = arith.constant 0 : i32
    return %c0_i32, %c0_i32_0 : i32, i32
  }
  func.func @transform_4(%arg0: i32, %arg1: i32) -> (i32, i32) {
    %c0_i32 = arith.constant 0 : i32
    %c0_i32_0 = arith.constant 0 : i32
    %c0_i32_1 = arith.constant 0 : i32
    return %c0_i32, %c0_i32_0 : i32, i32
  }
  func.func @transform_5(%arg0: i32, %arg1: i32) -> (i32, i32) {
    %c0_i32 = arith.constant 0 : i32
    return %arg0, %arg1 : i32, i32
  }
}

</mosaic_0001>

<bundles_post_ra>
// kernel: tpu_custom_call.1
= control target key start
LH: loop header
LB: loop body
LE: loop exit
PB: predicated region body
PF: predicated region fallthrough
CT: control target
= control target key end

     0   :  { %10 = vsyncpa [#allocation4], 0  ;;  %s1070_s0 = inlined_call_operand.hbm [shape: f32[16,32], index: 0, kind: input, shape index: {}]   ;;  %s1071_s1 = inlined_call_operand.hbm [shape: f32[32,32], index: 1, kind: input, shape index: {}]   ;;  %s1072_s2 = inlined_call_operand.vmem [shape: f32[1,32], index: 2, kind: input, shape index: {}]   ;;  %s1073_s3 = inlined_call_operand.vmem [shape: f32[1,32], index: 3, kind: input, shape index: {}]   ;;  %s1074_s4 = inlined_call_operand.vmem [shape: f32[1,32], index: 4, kind: input, shape index: {}]   ;;  %s1075_s5 = inlined_call_operand.hbm [shape: f32[16,32], index: 5, kind: output, shape index: {}]  }
   0x1   :  { %12 = vsyncpa [#allocation4 + $0x1], 0 }
   0x2   :  { %13 = vsyncpa [#allocation7], 0 }
   0x3   :  { %14 = vsyncpa [#allocation5], 0 }
   0x4   :  { %16 = vsyncpa [#allocation5 + $0x1], 0  ;;  %s838_s18 = smov 0   ;;  %s840_s19 = smov 0  }
   0x5   :  { %s842_s20 = smov 0   ;;  %s844_s21 = smov 0  }
   0x6   :  { %s846_s22 = smov 0   ;;  %s848_s23 = smov 0  }
   0x7 LB: > { %s532_s24 = sadd.s32 4294967295, %s798_s23   ;;  %s533_s25 = sadd.s32 4294967294, %s798_s23   ;;  %s798_s23 = sphi %s848_s23, %s22_s23   ;;  %s794_s22 = sphi %s846_s22, %s1099_s22   ;;  %s790_s21 = sphi %s844_s21, %s1098_s21   ;;  %s786_s20 = sphi %s842_s20, %s1097_s20   ;;  %s782_s19 = sphi %s840_s19, %s1096_s19   ;;  %s778_s18 = sphi %s838_s18, %s1095_s18  }
   0x8   : > { %p54_p0 = scmp.ne.s32.totalorder %s782_s19, %s778_s18  ;;  %p872_p1 = scmp.eq.s32.totalorder %s532_s24, 0 }
   0x9   : > { %p876_p2 = scmp.eq.s32.totalorder %s532_s24, 1  ;;  %p180_p3 = scmp.eq.s32.totalorder %s533_s25, 1 }
   0xa   : > { %s1080_s26 = scalar_select %p872_p1, 1, 0 }
   0xb   : > { %s1081_s27 = scalar_select %p876_p2, 1, 0 }
   0xc   : > { %p882_p4 = por %p872_p1, %p54_p0  ;;  %p534_p5 = scmp.ge.s32.totalorder %s798_s23, 1 }
   0xd   : > { %p887_p6 = por %p180_p3, %p54_p0  ;;  %p187_p7 = scmp.lt.s32.totalorder %s798_s23, 3 }
   0xe   : > { %s1082_s28 = scalar_select %p882_p4, 1, 0 }
   0xf   : > { %s1083_s29 = scalar_select %p887_p6, 1, 0 }
  0x10   : > { %p892_p8 = pnand %p534_p5, %p187_p7  ;;  %s800_s6 = smov [#allocation6]  }
  0x11   : > { %s201_s7 = sshll.u32 %s800_s6, 4  ;;  %s34_s9 = sadd.s32 1, %s794_s22  ;;  %s202_s7 = int_to_ptr.vmem [resolvable:$true] %s201_s7 }
  0x12   : > { %s1084_s30 = scalar_select %p892_p8, 1, 0 }
  0x13   : > { %p582_p9 = pneg %p892_p8  ;;  %s654_s12 = scalar_lea.hbm %s1071_s1, 512 }
  0x14   : > { %p655_p12 = scmp.ne.s32.totalorder %s1071_s1, %s654_s12  ;;  %p661_p5 = scmp.lt.u32.totalorder %s654_s12, %s1071_s1 }
  0x15   : > { %p901_p11 = pnand %p582_p9, %p872_p1 }
  0x17   : > { %p656_p13 = pneg %p901_p11 }
  0x19   : > { %p657_p0 = pnand %p656_p13, %p655_p12 }
  0x1b   : > { %p658_p3 = pneg %p657_p0 }
  0x1d   : > { %p663_p7 = pnand %p661_p5, %p658_p3 }
  0x1f   : > { %666 = shalt.err (!%p663_p7)
}
  0x20   : > { %s667_s17 = scalar_lea.vmem %s202_s7, 512  ;;  %p675_p1 = scmp.lt.s32.totalorder %s202_s7, %s202_s7 }
  0x21   : > { %p668_p9 = scmp.ne.s32.totalorder %s202_s7, %s667_s17  ;;  %p676_p4 = scmp.lt.s32.totalorder %s667_s17, %s667_s17 }
  0x23   : > { %p670_p10 = pnand %p668_p9, %p656_p13  ;;  %p677_p8 = por %p676_p4, %p675_p1 }
  0x25   : > { %p671_p6 = pneg %p670_p10 }
  0x27   : > { %p678_p2 = pnand %p677_p8, %p671_p6 }
  0x29   : > { %681 = shalt.err (!%p678_p2)
}
  0x2a   : > { %s801_s24 = smov 128   ;;  %s802_s25 = smov 8  }
  0x2b   : > { %585 = dma.hbm_to_vmem [thread:$0]  (!%p901_p11), %s1071_s1, 512, %s202_s7, [#allocation7], %s801_s24, %s801_s24, %s802_s25  }
  0x2c   : > { %p36_p1 = scmp.ge.s32.totalorder %s34_s9, 2  ;;  %s41_s11 = sadd.s32 1, %s786_s20 }
  0x2d   : > { %p48_p2 = scmp.ne.s32.totalorder %s786_s20, %s782_s19  ;;  %p49_p4 = scmp.eq.s32.totalorder %s798_s23, 0 }
  0x2e   : > { %s1101_s9 = smov (%p36_p1, %s34_s9), 0  ;;  %p1087_p8 = scmp.ne.s32.totalorder %s1081_s27, 0 }
  0x2f   : > { %p928_p6 = por %p49_p4, %p48_p2  ;;  %s38_s8 = ssub.s32 %s794_s22, %s1101_s9 }
  0x30   : > { %p934_p10 = por %p1087_p8, %p48_p2  ;;  %p595_p12 = scmp.lt.s32.totalorder %s798_s23, 2 }
  0x31   : > { %p39_p11 = scmp.eq.s32.totalorder %s38_s8, 0  ;;  %s227_s7 = sand.u32 1, %s786_s20  }
  0x32   : > { %s538_s14 = sshll.u32 %s227_s7, 3  ;;  %s539_s16 = sshll.u32 %s794_s22, 7 }
  0x33   : > { %s943_s15 = scalar_select %p39_p11, %s786_s20, %s41_s11  }
  0x34   : > { %s949_s25 = scalar_lea.hbm %s1070_s0, %s539_s16  ;;  %s231_s27 = scalar_lea.vmem [#allocation3], %s538_s14 }
  0x35   : > { %s238_s6 = sshll.u32 %s231_s27, 4  ;;  %p955_p13 = pnand %p595_p12, %p928_p6  ;;  %s951_s6 = int_to_ptr.vmem [resolvable:$true] %s238_s6 }
  0x36   : > { %s228_s11 = scalar_lea.sflag [#allocation4], %s227_s7  ;;  %s682_s8 = scalar_lea.hbm %s949_s25, 128 }
  0x37   : > { %p683_p0 = scmp.ne.s32.totalorder %s949_s25, %s682_s8  ;;  %p684_p3 = pneg %p955_p13 }
  0x38   : > { %s687_s17 = scalar_lea.hbm %s1070_s0, 256  ;;  %p688_p9 = scmp.lt.u32.totalorder %s949_s25, %s1070_s0 }
  0x39   : > { %p685_p5 = pnand %p684_p3, %p683_p0  ;;  %p689_p1 = scmp.lt.u32.totalorder %s687_s17, %s682_s8 }
  0x3a   : > { %p691_p4 = scmp.lt.u32.totalorder %s682_s8, %s949_s25 }
  0x3b   : > { %p686_p7 = pneg %p685_p5  ;;  %p690_p2 = por %p689_p1, %p688_p9 }
  0x3d   : > { %p692_p6 = por %p691_p4, %p690_p2 }
  0x3f   : > { %p693_p8 = pnand %p692_p6, %p686_p7 }
  0x41   : > { %696 = shalt.err (!%p693_p8)
}
  0x42   : > { %s697_s7 = scalar_lea.vmem %s951_s6, 128  ;;  %s803_s27 = smov [#allocation3]  }
  0x43   : > { %p698_p12 = scmp.ne.s32.totalorder %s951_s6, %s697_s7  ;;  %s702_s14 = sshll.u32 %s803_s27, 4  ;;  %s703_s14 = int_to_ptr.vmem [resolvable:$false] %s702_s14 }
  0x44   : > { %s704_s16 = scalar_lea.vmem %s703_s14, 256  ;;  %p705_p5 = scmp.lt.s32.totalorder %s951_s6, %s703_s14 }
  0x45   : > { %p700_p11 = pnand %p698_p12, %p684_p3  ;;  %p706_p9 = scmp.lt.s32.totalorder %s704_s16, %s697_s7 }
  0x47   : > { %p701_p0 = pneg %p700_p11  ;;  %p707_p1 = por %p706_p9, %p705_p5 }
  0x49   : > { %p708_p2 = pnand %p707_p1, %p701_p0 }
  0x4b   : > { %711 = shalt.err (!%p708_p2)
}
  0x4c   : > { %589 = dma.hbm_to_vmem [thread:$0]  (!%p955_p13), %s949_s25, 128, %s951_s6, %s228_s11  }
  0x4d   : > { %p1090_p7 = scmp.ne.s32.totalorder %s1084_s30, 0 }
  0x4e   : > { %s987_s8 = sand.u32 (!%p1090_p7), 1, %s782_s19   ;;  %p1091_p3 = scmp.ne.s32.totalorder (!%p1090_p7), %s1082_s28, 0 }
  0x4f   : > { %247 = sbr.rel (%p1090_p7) target bundleno = 640 (0x280), region = 40  ;;  %s541_s17 = sshll.u32 (!%p1090_p7), %s987_s8, 3 }
  0x50   : > { %s250_s12 = scalar_lea.sflag (!%p1090_p7), [#allocation4], %s987_s8  ;;  %s253_s24 = scalar_lea.vmem (!%p1090_p7), [#allocation3], %s541_s17 }
  0x56   : > { %765 = dma.done.wait (%p1091_p3), %s250_s12, 128  }
  0x57   : > { %767 = vsyncadd (%p1091_p3), %s250_s12, 4294967168  ;;  %p1092_p13 = scmp.ne.s32.totalorder %s1080_s26, 0 }
  0x59   : > { %769 = dma.done.wait (%p1092_p13), [#allocation7], 512  }
  0x5a   : > { %771 = vsyncadd (%p1092_p13), [#allocation7], 4294966784  ;;  %vm295_vm0 = vcmask 261120   ;;  %v294_v0 = vld [vmem:[%s253_s24] sm:$0xff]  ;;  %v328_v7 = vld [vmem:[#allocation6] sm:$0xff]  ;;  %v804_v10 = vmov 0.0|0.0  }
  0x5b   : > { %v296_v1 = vsel %vm295_vm0, %v294_v0, 0.0  ;;  %v329_v8 = vld [vmem:[#allocation6 + $0x8] sm:$0xff]  ;;  %568 = vmatprep.subr.bf16.mxu0 %v804_v10  ;;  %v330_v11 = vld [vmem:[#allocation6 + $0x10] sm:$0xff]  ;;  %v331_v12 = vld [vmem:[#allocation6 + $0x18] sm:$0xff]  ;;  %vm805_vm1 = vmmov 0   ;;  %v806_v14 = vmov 0.0  }
  0x5c   : > { %297 = vadd.xlane.f32.xlu0 %v296_v1  ;;  %v569_v9 = vpack.c.bf16 %v329_v8, %v328_v7  ;;  %v572_v13 = vpack.c.bf16 %v331_v12, %v330_v11  ;;  %565 = vmatprep.mubr.msk.f32.mxu0 %vm805_vm1, %v806_v14  ;;  %v544_v19 = vld [vmem:[%s1073_s3] ss:$0 sm:$0xff]  ;;  %s549_s11 = sshll.u32 %s790_s21, 7  ;;  %s286_s7 = scalar_lea.vmem [#allocation8], %s541_s17 }
  0x5d   : > { %v545_v21 = vld [vmem:[%s1074_s4] ss:$0 sm:$0xff]  ;;  %s429_s27 = sshll.u32 %s286_s7, 4  ;;  %s1020_s12 = scalar_lea.hbm %s1075_s5, %s549_s11  ;;  %s1022_s27 = int_to_ptr.vmem [resolvable:$true] %s429_s27 }
  0x5e   : > { %570 = vmatpush3.bf16.msra.mxu0 %v569_v9  ;;  %v546_v25 = vld [vmem:[%s1072_s2] ss:$0 sm:$0xff]  ;;  %s415_s24 = scalar_lea.sflag [#allocation5], %s987_s8  ;;  %s712_s21 = scalar_lea.vmem %s1022_s27, 128 }
  0x5f   : > { %571 = vmatprep.subr.bf16.mxu0 %v804_v10  ;;  %p713_p4 = scmp.ne.s32.totalorder %s1022_s27, %s712_s21  ;;  %s807_s17 = smov [#allocation8]  }
  0x60   : > { %s716_s26 = sshll.u32 %s807_s17, 4  ;;  %s717_s26 = int_to_ptr.vmem [resolvable:$false] %s716_s26 }
  0x61   : > { %p714_p6 = pnand %p713_p4, %p934_p10  ;;  %s718_s28 = scalar_lea.vmem %s717_s26, 256 }
  0x62   : > { %573 = vmatpush3.bf16.msra.mxu0 %v572_v13  ;;  %p719_p12 = scmp.lt.s32.totalorder %s1022_s27, %s717_s26  ;;  %p720_p11 = scmp.lt.s32.totalorder %s718_s28, %s712_s21 }
  0x63   : > { %p715_p8 = pneg %p714_p6 }
  0x64   : > { %p721_p0 = por %p720_p11, %p719_p12 }
  0x66   : > { %p722_p5 = pnand %p721_p0, %p715_p8 }
  0xe9   : > { %v298_v2 = vpop.xlane.xlu0 %297 }
  0xea   : > { %v300_v3 = vmul.f32 0.03125, %v298_v2 }
  0xec   : > { %v301_v4 = vsub.f32 %v294_v0, %v300_v3 }
  0xee   : > { %v302_v5 = vmul.f32 %v301_v4, %v301_v4 }
  0xf0   : > { %v303_v6 = vsel %vm295_vm0, %v302_v5, 0.0 }
  0xf1   : > { %304 = vadd.xlane.f32.xlu0 %v303_v6 }
 0x17e   : > { %v305_v15 = vpop.xlane.xlu0 %304 }
 0x17f   : > { %v306_v16 = vmul.f32 0.03125, %v305_v15 }
 0x181   : > { %v307_v17 = vadd.f32 1e-05, %v306_v16 }
 0x183   : > { %652 = vrsqrt.f32 %v307_v17 }
 0x18d   : > { %v653_v18 = vpop.eup %652 }
 0x18e   : > { %v309_v20 = vmul.f32 %v653_v18, %v301_v4 }
 0x190   : > { %v317_v22 = vmul.f32 %v544_v19, %v309_v20 }
 0x192   : > { %v325_v23 = vadd.f32 %v545_v21, %v317_v22 }
 0x194   : > { %326 = vst.msk [vmem:[#allocation2] sm:$0xff] %vm295_vm0, %v325_v23 }
 0x19b   : > { %v327_v24 = vld [vmem:[#allocation2] sm:$0xff] }
 0x19c   : > { %566 = vmatmul.mubr.msk.f32.vlgmr.msra.gmra.mrb[0].mxu0 %vm295_vm0, %v327_v24 }
 0x26f   : > { %v409_v26 = vpop.f32.mrb[0].mxu0 }
 0x270   : > { %v410_v27 = vadd.f32 %v546_v25, %v409_v26  ;;  %v567_v28 = vpop.f32.mrb[1].mxu0 }
 0x272   : > { %413 = vst.msk [vmem:[%s286_s7] sm:$0xff] %vm295_vm0, %v410_v27 }
 0x273   : > { %725 = shalt.err (!%p722_p5)
}
 0x274   : > { %s726_s8 = scalar_lea.hbm %s1020_s12, 128  ;;  %s730_s6 = scalar_lea.hbm %s1075_s5, 256 }
 0x275   : > { %p727_p9 = scmp.ne.s32.totalorder %s1020_s12, %s726_s8  ;;  %p731_p7 = scmp.lt.u32.totalorder %s1020_s12, %s1075_s5 }
 0x276   : > { %p732_p3 = scmp.lt.u32.totalorder %s730_s6, %s726_s8  ;;  %p734_p4 = scmp.lt.u32.totalorder %s726_s8, %s1020_s12 }
 0x277   : > { %p728_p1 = pnand %p727_p9, %p934_p10 }
 0x278   : > { %p733_p13 = por %p732_p3, %p731_p7 }
 0x279   : > { %p729_p2 = pneg %p728_p1 }
 0x27a   : > { %p735_p6 = por %p734_p4, %p733_p13 }
 0x27c   : > { %p736_p8 = pnand %p735_p6, %p729_p2 }
 0x27e   : > { %739 = shalt.err (!%p736_p8)
}
 0x27f   : > { %580 = dma.vmem_to_hbm [thread:$0]  (%p934_p10), %s1022_s27, 128, %s1020_s12, %s415_s24  }
 0x280 PF: > { %s441_s7 = sand.u32 1, %s778_s18   ;;  %p1093_p12 = scmp.ne.s32.totalorder %s1083_s29, 0 }
 0x281   : > { %p1094_p11 = scmp.ge.s32.totalorder %s798_s23, 2  ;;  %s442_s14 = scalar_lea.sflag [#allocation5], %s441_s7 }
 0x283   : > { %p591_p0 = pnand %p1094_p11, %p1093_p12 }
 0x285   : > { %773 = dma.done.wait (!%p591_p0), %s442_s14, 128  }
 0x286   : > { %775 = vsyncadd (!%p591_p0), %s442_s14, 4294967168  ;;  %s22_s23 = sadd.s32 1, %s798_s23   ;;  %s1095_s18 = smov %s782_s19 }
 0x287   : > { %p19_p5 = scmp.ge.s32.totalorder %s22_s23, 4   ;;  %s1096_s19 = smov %s786_s20 }
 0x288   : > { %s1097_s20 = smov %s943_s15  ;;  %s1098_s21 = smov %s794_s22 }
 0x289   : > { %s1099_s22 = smov %s1101_s9  ;;  %21 = sbr.rel (!%p19_p5) target bundleno = 7 (0x7), region = 97 }
 0x290   :  { %447 = vsyncpa [#allocation4], 1 }
 0x291   :  { %449 = vsyncpa [#allocation4 + $0x1], 1 }
 0x292   :  { %450 = vsyncpa [#allocation7], 1 }
 0x293   :  { %451 = vsyncpa [#allocation5], 1 }
 0x294   :  { %453 = vsyncpa [#allocation5 + $0x1], 1 }

</bundles_post_ra>
